<compile_context>
chip_gen: v7x
topology: tpu7x:2x2x1
jax: 0.10.0
libtpu: 0.0.40
codegen_flags: <defaults>
</compile_context>

<pallas_src>
import jax
import jax.numpy as jnp
from jax.experimental import pallas as pl
from jax.experimental.pallas import tpu as pltpu
import numpy as np

NEG_POS_RATIO = 3.0
NEG_LABEL_IDX = 0


def _round_up(x, m):
    return ((x + m - 1) // m) * m


def _multibox_partial_sums_kernel(ce_ref, code_ref, delta_ref, out_ref):
    """One anchor tile per grid step; emits this tile's four partial sums.

    ce_ref    : (1, TN) f32  cross-entropy at the ground-truth class, per anchor
    code_ref  : (1, TN) bf16 selection code: 0 = unselected, 1 = hard neg, 2 = positive
    delta_ref : (4, TN) f32  pred_loc - gt_bbox_loc (coords on sublanes, anchors on lanes)
    out_ref   : (1, 1, 4) f32 [sum ce*sel, sum sel, sum smoothL1*pos, sum pos]
    """
    ce = ce_ref[...]                                      # (1, TN)
    code = code_ref[...].astype(jnp.float32)              # (1, TN)
    sel = (code > 0.5).astype(jnp.float32)                # pos or hard-neg
    pos = (code > 1.5).astype(jnp.float32)                # positive anchors

    # ---- smooth L1 (Huber, beta=1) on the precomputed box deltas ----
    d = delta_ref[...]                                    # (4, TN)
    ad = jnp.abs(d)
    sl1 = jnp.where(ad < 1.0, 0.5 * d * d, ad - 0.5)
    # Reduce over the 4 coord sublanes first, then mask (avoids broadcasting
    # pos up to (4, TN)).
    sl1_anchor = jnp.sum(sl1, axis=0, keepdims=True)      # (1, TN)

    # ---- four per-tile partial sums ----
    s_ce = jnp.sum(ce * sel, axis=1, keepdims=True)       # (1, 1)
    s_sel = jnp.sum(sel, axis=1, keepdims=True)
    s_sl1 = jnp.sum(sl1_anchor * pos, axis=1, keepdims=True)
    s_pos = jnp.sum(pos, axis=1, keepdims=True)

    row = jnp.concatenate([s_ce, s_sel, s_sl1, s_pos], axis=1)   # (1, 4)
    out_ref[...] = row.reshape(1, 1, 4)


def multibox_loss(confidence, pred_loc, gt_class_labels, gt_bbox_loc,
                  neg_pos_ratio=NEG_POS_RATIO, anchor_tile=65536):
    """Returns (conf_loss, loc_huber_loss) scalars (PyTorch forward semantics)."""
    confidence = confidence.astype(jnp.float32)
    pred_loc = pred_loc.astype(jnp.float32)
    gt_bbox_loc = gt_bbox_loc.astype(jnp.float32)
    labels = gt_class_labels.astype(jnp.int32)
    B, A, C = confidence.shape
    N = B * A

    # ---- hard-negative mining (the torch.no_grad path) in plain JAX ----
    # TODO(synk): per-row descending sort/rank has no Pallas TPU primitive; it is
    # done here with a stable jnp.argsort (same ops as the reference, so tie
    # handling matches) and fed to the kernel as a selection code.
    log_sm = jax.nn.log_softmax(confidence, axis=2)
    neg_class_prob = -log_sm[:, :, NEG_LABEL_IDX]
    pos = labels > 0
    x = jnp.where(pos, -1.0, neg_class_prob)
    idx = jnp.argsort(-x, axis=1)                  # stable descending sort
    orders = jnp.argsort(idx, axis=1)
    num_pos = jnp.sum(pos, axis=1, keepdims=True)
    neg = orders < neg_pos_ratio * num_pos
    sel = jnp.logical_or(pos, neg)

    # CE at the label from the log_softmax already on hand (bit-exact w/ ref).
    ce = -jnp.take_along_axis(log_sm, labels[..., None], axis=2)[..., 0]   # (B, A)

    # Selection code 0/1/2 packed into a single bf16 stream (2 B/anchor).
    code = (sel.astype(jnp.float32) + pos.astype(jnp.float32)).astype(jnp.bfloat16)

    # Precomputed box delta (halves the loc stream; one transpose instead of two).
    delta = pred_loc - gt_bbox_loc                 # (B, A, 4)

    # ---- lane-dense, flattened layouts: anchors on the 128-lane axis ----
    # Split N into near-equal tiles of at most `anchor_tile` anchors (minimizes
    # padding while keeping per-step grid overhead negligible).
    num_tiles = max(1, (N + int(anchor_tile) - 1) // int(anchor_tile))
    TN = _round_up(-(-N // num_tiles), 128)
    N_pad = TN * num_tiles
    pad = N_pad - N

    ce_f = ce.reshape(1, N)                        # (1, N) f32
    code_f = code.reshape(1, N)                    # (1, N) bf16
    delta_t = delta.reshape(N, 4).T                # (4, N) f32

    if pad:
        ce_f = jnp.pad(ce_f, ((0, 0), (0, pad)))
        code_f = jnp.pad(code_f, ((0, 0), (0, pad)))       # code 0 -> excluded
        delta_t = jnp.pad(delta_t, ((0, 0), (0, pad)))

    # VMEM limit derived from the actual per-step tile (4 B ce + 2 B code +
    # 16 B delta per anchor), with generous headroom; caps well under v7x's
    # 64 MiB per-TC VMEM.
    step_bytes = TN * (4 + 2 + 16)
    vmem_limit = int(min(4 * step_bytes + (4 << 20), 64 * 1024 * 1024))

    partials = pl.pallas_call(
        _multibox_partial_sums_kernel,
        out_shape=jax.ShapeDtypeStruct((num_tiles, 1, 4), jnp.float32),
        grid=(num_tiles,),
        in_specs=[
            pl.BlockSpec((1, TN), lambda i: (0, i)),
            pl.BlockSpec((1, TN), lambda i: (0, i)),
            pl.BlockSpec((4, TN), lambda i: (0, i)),
        ],
        out_specs=pl.BlockSpec((1, 1, 4), lambda i: (i, 0, 0)),
        compiler_params=pltpu.CompilerParams(
            # Per-tile partial sums -> no cross-iteration state -> the grid
            # axis can be split across TensorCores (2x on v7x; no-op v5e/v6e).
            dimension_semantics=("parallel",),
            vmem_limit_bytes=vmem_limit,
        ),
    )(ce_f, code_f, delta_t)

    sums = jnp.sum(partials.reshape(num_tiles, 4), axis=0)   # (4,)
    ce_sel_sum, sel_sum, sl1_pos_sum, pos_sum = sums[0], sums[1], sums[2], sums[3]

    # Guarded divides (identical to the reference whenever positives exist).
    conf_loss = ce_sel_sum / jnp.maximum(sel_sum, 1.0)
    loc_loss = sl1_pos_sum / jnp.maximum(pos_sum * 4.0, 1.0)
    return conf_loss, loc_loss


# ---- pure-JAX reference (mirrors the PyTorch semantics) ----
def multibox_loss_ref(confidence, pred_loc, gt_class_labels, gt_bbox_loc,
                      neg_pos_ratio=NEG_POS_RATIO):
    log_sm = jax.nn.log_softmax(confidence, axis=2)
    neg_class_prob = -log_sm[:, :, NEG_LABEL_IDX]
    pos = gt_class_labels > 0
    x = jnp.where(pos, -1.0, neg_class_prob)
    idx = jnp.argsort(-x, axis=1)
    orders = jnp.argsort(idx, axis=1)
    num_pos = jnp.sum(pos, axis=1, keepdims=True)
    neg = orders < neg_pos_ratio * num_pos
    sel = pos | neg
    ce = -jnp.take_along_axis(log_sm, gt_class_labels[..., None].astype(jnp.int32),
                              axis=2)[..., 0]
    conf_loss = jnp.sum(jnp.where(sel, ce, 0.0)) / jnp.sum(sel)
    d = pred_loc - gt_bbox_loc
    ad = jnp.abs(d)
    sl1 = jnp.where(ad < 1.0, 0.5 * d * d, ad - 0.5)
    loc_loss = jnp.sum(jnp.where(pos[..., None], sl1, 0.0)) / (jnp.sum(pos) * 4.0)
    return conf_loss, loc_loss


if __name__ == "__main__":
    B, A, C = 2, 128, 8  # batch, anchors, classes

    key = jax.random.PRNGKey(0)
    k1, k2, k3, k4 = jax.random.split(key, 4)
    confidence = jax.random.normal(k1, (B, A, C), dtype=jnp.float32)
    gt_class_labels = jax.random.randint(k2, (B, A), 0, C, dtype=jnp.int32)
    pred_loc = jax.random.normal(k3, (B, A, 4), dtype=jnp.float32)
    gt_bbox_loc = jax.random.normal(k4, (B, A, 4), dtype=jnp.float32)

    # Small tile so the toy shapes exercise a multi-step parallel grid.
    fn = jax.jit(lambda c, p, l, g: multibox_loss(c, p, l, g, anchor_tile=128))
    conf_loss, loc_loss = jax.block_until_ready(
        fn(confidence, pred_loc, gt_class_labels, gt_bbox_loc))

    ref_conf, ref_loc = multibox_loss_ref(
        confidence, pred_loc, gt_class_labels, gt_bbox_loc)

    np.testing.assert_allclose(np.asarray(conf_loss), np.asarray(ref_conf),
                               rtol=1e-5, atol=1e-5)
    np.testing.assert_allclose(np.asarray(loc_loss), np.asarray(ref_loc),
                               rtol=1e-5, atol=1e-5)

    print("KERNEL_OK")
</pallas_src>

<mosaic_0001>
module attributes {stable_mosaic.version = 11 : i64} {
  func.func @_multibox_partial_sums_kernel(%arg0: i32, %arg1: memref<1x128xf32, #tpu.memory_space<vmem>>, %arg2: memref<1x128xbf16, #tpu.memory_space<vmem>>, %arg3: memref<4x128xf32, #tpu.memory_space<vmem>>, %arg4: memref<1x1x4xf32, #tpu.memory_space<vmem>>) attributes {dimension_semantics = [#tpu.dimension_semantics<parallel>], iteration_bounds = array<i64: 2>, scalar_prefetch = 0 : i64, scratch_operands = 0 : i64, tpu.core_type = #tpu.core_type<tc>, window_params = [{transform_indices = @transform_0, window_bounds = array<i64: 1, 128>}, {transform_indices = @transform_1, window_bounds = array<i64: 1, 128>}, {transform_indices = @transform_2, window_bounds = array<i64: 4, 128>}, {transform_indices = @transform_3, window_bounds = array<i64: 1, 1, 4>}]} {
    %c0 = arith.constant 0 : index
    %c0_0 = arith.constant 0 : index
    %0 = vector.load %arg1[%c0, %c0_0] : memref<1x128xf32, #tpu.memory_space<vmem>>, vector<1x128xf32>
    %c0_1 = arith.constant 0 : index
    %c0_2 = arith.constant 0 : index
    %1 = vector.load %arg2[%c0_1, %c0_2] : memref<1x128xbf16, #tpu.memory_space<vmem>>, vector<1x128xbf16>
    %2 = arith.extf %1 : vector<1x128xbf16> to vector<1x128xf32>
    %cst = arith.constant 5.000000e-01 : f32
    %3 = vector.broadcast %cst : f32 to vector<1x128xf32>
    %4 = arith.cmpf ogt, %2, %3 : vector<1x128xf32>
    %5 = arith.extui %4 : vector<1x128xi1> to vector<1x128xi32>
    %6 = arith.sitofp %5 : vector<1x128xi32> to vector<1x128xf32>
    %cst_3 = arith.constant 1.500000e+00 : f32
    %7 = vector.broadcast %cst_3 : f32 to vector<1x128xf32>
    %8 = arith.cmpf ogt, %2, %7 : vector<1x128xf32>
    %9 = arith.extui %8 : vector<1x128xi1> to vector<1x128xi32>
    %10 = arith.sitofp %9 : vector<1x128xi32> to vector<1x128xf32>
    %c0_4 = arith.constant 0 : index
    %c0_5 = arith.constant 0 : index
    %11 = vector.load %arg3[%c0_4, %c0_5] : memref<4x128xf32, #tpu.memory_space<vmem>>, vector<4x128xf32>
    %12 = math.absf %11 : vector<4x128xf32>
    %cst_6 = arith.constant 1.000000e+00 : f32
    %13 = vector.broadcast %cst_6 : f32 to vector<4x128xf32>
    %14 = arith.cmpf olt, %12, %13 : vector<4x128xf32>
    %cst_7 = arith.constant 5.000000e-01 : f32
    %15 = vector.broadcast %cst_7 : f32 to vector<4x128xf32>
    %16 = arith.mulf %15, %11 : vector<4x128xf32>
    %17 = arith.mulf %16, %11 : vector<4x128xf32>
    %cst_8 = arith.constant 5.000000e-01 : f32
    %18 = vector.broadcast %cst_8 : f32 to vector<4x128xf32>
    %19 = arith.subf %12, %18 : vector<4x128xf32>
    %20 = arith.select %14, %17, %19 : vector<4x128xi1>, vector<4x128xf32>
    %cst_9 = arith.constant dense<0.000000e+00> : vector<128xf32>
    %21 = vector.multi_reduction <add>, %20, %cst_9 [0] : vector<4x128xf32> to vector<128xf32>
    %22 = vector.shape_cast %21 : vector<128xf32> to vector<1x128xf32>
    %23 = arith.mulf %0, %6 : vector<1x128xf32>
    %cst_10 = arith.constant dense<0.000000e+00> : vector<1xf32>
    %24 = vector.multi_reduction <add>, %23, %cst_10 [1] : vector<1x128xf32> to vector<1xf32>
    %25 = vector.shape_cast %24 : vector<1xf32> to vector<1x1xf32>
    %cst_11 = arith.constant dense<0.000000e+00> : vector<1xf32>
    %26 = vector.multi_reduction <add>, %6, %cst_11 [1] : vector<1x128xf32> to vector<1xf32>
    %27 = vector.shape_cast %26 : vector<1xf32> to vector<1x1xf32>
    %28 = arith.mulf %22, %10 : vector<1x128xf32>
    %cst_12 = arith.constant dense<0.000000e+00> : vector<1xf32>
    %29 = vector.multi_reduction <add>, %28, %cst_12 [1] : vector<1x128xf32> to vector<1xf32>
    %30 = vector.shape_cast %29 : vector<1xf32> to vector<1x1xf32>
    %cst_13 = arith.constant dense<0.000000e+00> : vector<1xf32>
    %31 = vector.multi_reduction <add>, %10, %cst_13 [1] : vector<1x128xf32> to vector<1xf32>
    %32 = vector.shape_cast %31 : vector<1xf32> to vector<1x1xf32>
    %33 = tpu.concatenate %25, %27, %30, %32 in 1 : vector<1x1xf32>, vector<1x1xf32>, vector<1x1xf32>, vector<1x1xf32> -> vector<1x4xf32>
    %34 = vector.shape_cast %33 : vector<1x4xf32> to vector<1x1x4xf32>
    %c0_14 = arith.constant 0 : index
    %c0_15 = arith.constant 0 : index
    %c0_16 = arith.constant 0 : index
    %35 = vector.load %arg4[%c0_14, %c0_15, %c0_16] : memref<1x1x4xf32, #tpu.memory_space<vmem>>, vector<1x1x4xf32>
    tpu.vector_store %arg4[%c0_14, %c0_15, %c0_16], %34 {strides = array<i32>} : memref<1x1x4xf32, #tpu.memory_space<vmem>>, vector<1x1x4xf32>,
    return
  }
  func.func @transform_0(%arg0: i32) -> (i32, i32) {
    %c0_i32 = arith.constant 0 : i32
    %c0_i32_0 = arith.constant 0 : i32
    return %c0_i32, %arg0 : i32, i32
  }
  func.func @transform_1(%arg0: i32) -> (i32, i32) {
    %c0_i32 = arith.constant 0 : i32
    %c0_i32_0 = arith.constant 0 : i32
    return %c0_i32, %arg0 : i32, i32
  }
  func.func @transform_2(%arg0: i32) -> (i32, i32) {
    %c0_i32 = arith.constant 0 : i32
    %c0_i32_0 = arith.constant 0 : i32
    return %c0_i32, %arg0 : i32, i32
  }
  func.func @transform_3(%arg0: i32) -> (i32, i32, i32) {
    %c0_i32 = arith.constant 0 : i32
    %c0_i32_0 = arith.constant 0 : i32
    %c0_i32_1 = arith.constant 0 : i32
    return %arg0, %c0_i32, %c0_i32_0 : i32, i32, i32
  }
}

</mosaic_0001>

<bundles_post_ra>
// kernel: _lambda_.1
= control target key start
LH: loop header
LB: loop body
LE: loop exit
PB: predicated region body
PF: predicated region fallthrough
CT: control target
= control target key end

     0   :  { %s353_s12 = smov 0   ;;  %s386_s0 = inlined_call_operand.vmem [shape: f32[1,256], index: 0, kind: input, shape index: {}]   ;;  %s387_s1 = inlined_call_operand.vmem [shape: bf16[1,256], index: 1, kind: input, shape index: {}]   ;;  %s388_s2 = inlined_call_operand.vmem [shape: f32[4,256], index: 2, kind: input, shape index: {}]   ;;  %s389_s3 = inlined_call_operand.vmem [shape: f32[2,1,4], index: 3, kind: output, shape index: {}]  }
   0x1 LB: > { %s304_s13 = sadd.s32 4294967295, %s330_s12   ;;  %p308_p0 = scmp.ge.s32.totalorder %s330_s12, 1  ;;  %s330_s12 = sphi %s353_s12, %s13_s12  }
   0x2   : > { %p152_p1 = scmp.lt.s32.totalorder %s330_s12, 3 }
   0x4   : > { %p153_p2 = pnand %p308_p0, %p152_p1 }
   0x5   : > { %p179_p3 = scmp.lt.s32.totalorder (!%p153_p2), %s304_s13, 1  ;;  %v332_v6 = vmov (!%p153_p2), 0.0   ;;  %vm217_vm1 = vcmask (!%p153_p2), 1040384   ;;  %vm208_vm3 = vcmask (!%p153_p2), 1043456   ;;  %vm231_vm5 = vcmask (!%p153_p2), 7168  }
   0x6   : > { %156 = sbr.rel (%p153_p2) target bundleno = 187 (0xbb), region = 32  ;;  %vm233_vm6 = vcmask (!%p153_p2), 15360   ;;  %vm235_vm7 = vcmask (!%p153_p2), 23552   ;;  %vm237_vm8 = vcmask (!%p153_p2), 24576  }
   0xd   : > { %s391_s13 = smov (!%p179_p3, %s304_s13), 1 }
   0xe   : > { %s181_s16 = scalar_lea.vmem %s386_s0, %s391_s13  ;;  %s184_s19 = scalar_lea.vmem %s387_s1, %s391_s13 }
   0xf   : > { %v193_v0 = vld [vmem:[%s184_s19] sm:$0x1]  ;;  %s309_s20 = sshll.u32 %s391_s13, 2  ;;  %s191_s26 = scalar_lea.vmem %s389_s3, %s391_s13 }
  0x10   : > { %v194_v1 = vunpack.c.l.bf16 %v193_v0  ;;  %s188_s23 = scalar_lea.vmem %s388_s2, %s309_s20  ;;  %v192_v2 = vld [vmem:[%s181_s16] sm:$0x1] }
  0x11   : > { %v201_v3 = vld [vmem:[%s188_s23] sm:$0xf] }
  0x12   : > { %vm195_vm0 = vcmp.gt.f32.partialorder %v194_v1, 0.5  ;;  %v202_v4 = vand.u32 2147483647, %v201_v3  ;;  %v204_v5 = vmul.f32 0.5, %v201_v3  ;;  %vm198_vm4 = vcmp.gt.f32.partialorder %v194_v1, 1.5 }
  0x13   : > { %v310_v7 = vsel %vm195_vm0, 1.0, %v332_v6  ;;  %v311_v20 = vsel %vm198_vm4, 1.0, %v332_v6 }
  0x14   : > { %v216_v8 = vmul.f32 %v310_v7, %v192_v2  ;;  %vm203_vm2 = vcmp.lt.f32.partialorder %v202_v4, 1.0  ;;  %v205_v9 = vmul.f32 %v204_v5, %v201_v3  ;;  %v312_v10 = vadd.f32 -0.5, %v202_v4 }
  0x15   : > { %v221_v13 = vsel %vm217_vm1, %v310_v7, 0.0  ;;  %v228_v24 = vsel %vm217_vm1, %v311_v20, 0.0 }
  0x16   : > { %v218_v11 = vsel %vm217_vm1, %v216_v8, 0.0  ;;  %v207_v12 = vsel %vm203_vm2, %v205_v9, %v312_v10 }
  0x17   : > { %219 = vadd.xlane.f32.xlu0 %v218_v11  ;;  %v209_v14 = vsel %vm208_vm3, %v207_v12, 0.0 }
  0x18   : > { %v210_v15 = vrot.slane %v209_v14, 4 }
  0x1a   : > { %v211_v16 = vadd.f32 %v210_v15, %v209_v14 }
  0x1b   : > { %222 = vadd.xlane.f32.xlu0 %v221_v13 }
  0x1c   : > { %v212_v17 = vrot.slane %v211_v16, 2 }
  0x1e   : > { %v213_v18 = vadd.f32 %v212_v17, %v211_v16 }
  0x20   : > { %v214_v19 = vrot.slane %v213_v18, 1 }
  0x22   : > { %v215_v21 = vadd.f32 %v214_v19, %v213_v18 }
  0x24   : > { %v224_v22 = vmul.f32 %v311_v20, %v215_v21 }
  0x26   : > { %v225_v23 = vsel %vm217_vm1, %v224_v22, 0.0 }
  0x27   : > { %226 = vadd.xlane.f32.xlu1 %v225_v23 }
  0x2b   : > { %229 = vadd.xlane.f32.xlu1 %v228_v24 }
  0xa4   : > { %v220_v25 = vpop.xlane.xlu0 %219 }
  0xa8   : > { %v223_v26 = vpop.xlane.xlu0 %222 }
  0xa9   : > { %v232_v28 = vsel %vm231_vm5, %v220_v25, %v223_v26 }
  0xb4   : > { %v227_v27 = vpop.xlane.xlu1 %226 }
  0xb5   : > { %v234_v29 = vsel %vm233_vm6, %v232_v28, %v227_v27 }
  0xb8   : > { %v230_v30 = vpop.xlane.xlu1 %229 }
  0xb9   : > { %v236_v31 = vsel %vm235_vm7, %v234_v29, %v230_v30 }
  0xba   : > { %238 = vst.msk [vmem:[%s191_s26] sm:$0x1] %vm237_vm8, %v236_v31 }
  0xbb PF: > { %s13_s12 = sadd.s32 1, %s330_s12  }
  0xbc   : > { %p10_p4 = scmp.ge.s32.totalorder %s13_s12, 4  }
  0xbe   :  { %12 = sbr.rel (!%p10_p4) target bundleno = 1 (0x1), region = 68 }

</bundles_post_ra>
